<compile_context>
chip_gen: v5e
topology: v5e:2x2
jax: 0.10.0
libtpu: 0.0.40
codegen_flags: <defaults>
</compile_context>

<pallas_src>
import functools

import jax
import jax.numpy as jnp
from jax.experimental import pallas as pl
from jax.experimental.pallas import tpu as pltpu

RGB_COLOR_DIM = 3


# ----------------------------- Pallas kernel ------------------------------- #
def _fused_texture_field_kernel(x_ref, wmain_ref, wd1_ref, bias_ref, out_ref):
    """Fused spatial TextureField + directional MLP, feature-major layout.

    x_ref:     (S, TN)   bf16  packed [features ; view_emb ; zero pad] slab
    wmain_ref: (7, S, S) bf16  zero-padded weight blocks (see pack_params)
    wd1_ref:   (3, S)    bf16  final RGB head weight
    bias_ref:  (6, S, 1) f32   zero-padded biases (broadcast along lanes)
    out_ref:   (3, TN)   f32   RGB, lane-dense (points on lanes)
    """
    f32 = jnp.float32
    bf16 = jnp.bfloat16
    x = x_ref[...]                                            # (S, TN) bf16

    def mm(w, a):                                             # bf16 MXU, f32 acc
        return jnp.dot(w, a, preferred_element_type=f32)

    # --- spatial TextureField (return_rgb=False -> final nonlin is ReLU) ----
    h = jnp.maximum(mm(wmain_ref[0], x) + bias_ref[0], 0.0)            # L0 + ReLU
    h = jnp.maximum(mm(wmain_ref[1], h.astype(bf16)) + bias_ref[1], 0.0)
    # skip layer: Linear(concat(h, features)) + ReLU as a split matmul
    h = jnp.maximum(mm(wmain_ref[2], h.astype(bf16))
                    + mm(wmain_ref[3], x) + bias_ref[2], 0.0)
    bneck = jnp.maximum(mm(wmain_ref[4], h.astype(bf16)) + bias_ref[3], 0.0)

    # --- directional MLP: Linear(concat(bneck, view_emb)) + ReLU, split matmul
    d = jnp.maximum(mm(wmain_ref[5], bneck.astype(bf16))
                    + mm(wmain_ref[6], x) + bias_ref[4], 0.0)

    logits = mm(wd1_ref[...], d.astype(bf16)) + bias_ref[5][:RGB_COLOR_DIM]
    out_ref[...] = jax.nn.sigmoid(logits)                    # (3, TN)


# ------------------------------ packing helpers ----------------------------- #
def _round_up(x, m):
    return ((x + m - 1) // m) * m


def pack_params(params, in_dim, emb_dim):
    """Pack the 6 Linear layers (PyTorch convention: W (out,in), b (out,)) into
    3 padded slabs.  Weights are placed into zero blocks so that the kernel's
    split matmuls over the single (S, N) input slab are exactly equivalent to
    the original concat-then-Linear layers (zero columns kill the cross terms,
    zero bias rows keep padded activation rows at ReLU(0)=0)."""
    hidden = params["w0"].shape[0]
    bneck = params["w3"].shape[0]
    dhid = params["wd0"].shape[0]
    s_pad = _round_up(max(in_dim + emb_dim, hidden, bneck, dhid), 8)

    def place(block, r0=0, c0=0):
        z = jnp.zeros((s_pad, s_pad), jnp.float32)
        return z.at[r0:r0 + block.shape[0], c0:c0 + block.shape[1]].set(block)

    wmain = jnp.stack([
        place(params["w0"]),                          # L0: reads feature rows [0, in_dim)
        place(params["w1"]),                          # L1
        place(params["wsk"][:, :hidden]),             # L2 skip: hidden half of the concat
        place(params["wsk"][:, hidden:]),             # L2 skip: feature half (cols 0..in_dim)
        place(params["w3"]),                          # L3 -> bottleneck (rows 0..bneck)
        place(params["wd0"][:, :bneck]),              # D0: bottleneck half of the concat
        place(params["wd0"][:, bneck:], c0=in_dim),   # D0: view-emb half, cols [in_dim, in_dim+emb)
    ]).astype(jnp.bfloat16)

    wd1 = (jnp.zeros((RGB_COLOR_DIM, s_pad), jnp.float32)
           .at[:, :dhid].set(params["wd1"]).astype(jnp.bfloat16))

    def padb(b):
        return jnp.zeros((s_pad,), jnp.float32).at[:b.shape[0]].set(b)

    bias = jnp.stack([padb(params[k]) for k in
                      ("b0", "b1", "bsk", "b3", "bd0", "bd1")])[..., None]
    return wmain, wd1, bias, int(s_pad)


def pack_inputs(features, view_emb, s_pad, n_pad):
    """Concat features + view-dir embedding into one feature-major bf16 slab."""
    n, in_dim = features.shape
    emb_dim = view_emb.shape[1]
    x = jnp.zeros((s_pad, n_pad), jnp.float32)
    x = x.at[:in_dim, :n].set(features.T)
    x = x.at[in_dim:in_dim + emb_dim, :n].set(view_emb.T)
    return x.astype(jnp.bfloat16)


def _pick_tile(n, tile_n):
    """128-aligned lane tile: as large as requested, but shrunk so the grid
    keeps >= 2 steps when N allows (the 2 v7x TensorCores share 'parallel')."""
    lane = 128
    tile_n = max(lane, (tile_n // lane) * lane)
    tile = min(tile_n, max(lane, lane * (_round_up(n, 2 * lane) // (2 * lane))))
    n_pad = _round_up(n, tile)
    return tile, n_pad


# ------------------------------- wrapper ------------------------------------ #
@functools.partial(jax.jit, static_argnames=("s_pad", "tile_n"))
def texture_field_forward(features, view_emb, wmain, wd1, bias, *, s_pad,
                          tile_n=2048):
    """features: (N, in_dim) f32, view_emb: (N, emb_dim) f32 -> (N, 3) f32 RGB."""
    n, _ = features.shape
    tile, n_pad = _pick_tile(n, tile_n)
    grid = (n_pad // tile,)

    x = pack_inputs(features, view_emb, s_pad, n_pad)

    # VMEM/step at tile=2048: ~128KB input + ~64KB output (x2 double-buffered)
    # + ~0.3MB resident weight/bias slabs -> far under the default scoped VMEM
    # limits on v5e/v6e/v7x; no vmem_limit override needed.
    out = pl.pallas_call(
        _fused_texture_field_kernel,
        out_shape=jax.ShapeDtypeStruct((RGB_COLOR_DIM, n_pad), jnp.float32),
        grid=grid,
        in_specs=[
            pl.BlockSpec((s_pad, tile), lambda i: (0, i)),       # input slab tile
            pl.BlockSpec(wmain.shape, lambda i: (0, 0, 0)),      # resident weight slab
            pl.BlockSpec(wd1.shape, lambda i: (0, 0)),           # RGB head weight
            pl.BlockSpec(bias.shape, lambda i: (0, 0, 0)),       # bias slab
        ],
        out_specs=pl.BlockSpec((RGB_COLOR_DIM, tile), lambda i: (0, i)),
        compiler_params=pltpu.CompilerParams(dimension_semantics=("parallel",)),
    )(x, wmain, wd1, bias)

    return out[:, :n].T                                          # (N, 3) RGB


# ------------------------ plain-JAX glue (preprocessing) -------------------- #
def calculate_angle_between_vectors(a, b, eps=1e-8):
    # matches F.cosine_similarity(a, b, dim=-1) followed by torch.acos; cosine
    # is clipped to [-1, 1] so round-off never produces NaN angles.
    num = jnp.sum(a * b, axis=-1)
    den = (jnp.maximum(jnp.linalg.norm(a, axis=-1), eps)
           * jnp.maximum(jnp.linalg.norm(b, axis=-1), eps))
    return jnp.arccos(jnp.clip(num / den, -1.0, 1.0))


def fourier_feat_enc(x, num_freqs, include_input=True):
    """FourierFeatEnc(num_freqs, include_input, use_logspace=True) on x: (N, D)."""
    # TODO(synk): exact sin/cos interleaving of the original FourierFeatEnc is
    # not given in the source; we use [x, sin(2^k x)..., cos(2^k x)...] with the
    # same output dimensionality (D*num_freqs*2 + D if include_input).
    freqs = 2.0 ** jnp.arange(num_freqs, dtype=jnp.float32)        # logspace freqs
    xf = x[..., None] * freqs                                      # (N, D, K)
    enc = jnp.concatenate([jnp.sin(xf), jnp.cos(xf)], axis=-1)     # (N, D, 2K)
    enc = enc.reshape(x.shape[0], -1)
    if include_input:
        enc = jnp.concatenate([x, enc], axis=-1)
    return enc


def get_embedded_view_dir_intrinsic(unit_ray_dirs, hit_face_idxs, face_normals,
                                    view_dir_embedding_size, include_view_dir):
    # data-dependent gather stays in plain JAX (glue), not in the kernel.
    hit_face_normals = face_normals[hit_face_idxs]
    angles = calculate_angle_between_vectors(-unit_ray_dirs, hit_face_normals)
    return fourier_feat_enc(angles[:, None], view_dir_embedding_size,
                            include_input=include_view_dir)


# --------------------------- reference & init -------------------------------- #
def reference_forward(features, view_emb, p):
    """Plain-JAX f32 reference of the module's forward (for validation)."""
    relu = lambda v: jnp.maximum(v, 0.0)
    # TODO(synk): LinearWithConcatAndActivation is assumed to compute
    # Linear(cat((x, y), dim=-1)) + activation with (hidden, features) order.
    h = relu(features @ p["w0"].T + p["b0"])
    h = relu(h @ p["w1"].T + p["b1"])
    h = relu(jnp.concatenate([h, features], axis=-1) @ p["wsk"].T + p["bsk"])
    bneck = relu(h @ p["w3"].T + p["b3"])
    d = relu(jnp.concatenate([bneck, view_emb], axis=-1) @ p["wd0"].T + p["bd0"])
    return jax.nn.sigmoid(d @ p["wd1"].T + p["bd1"])


def _linear_init(key, fan_in, fan_out):
    # PyTorch nn.Linear default init, weight stored as (out_features, in_features)
    kw, kb = jax.random.split(key)
    bound = 1.0 / jnp.sqrt(jnp.float32(fan_in))
    w = jax.random.uniform(kw, (fan_out, fan_in), jnp.float32, -bound, bound)
    b = jax.random.uniform(kb, (fan_out,), jnp.float32, -bound, bound)
    return w, b


def init_params(key, in_dim, hidden_dim, bottleneck_vec_dim, emb_dim,
                directional_hidden_dim):
    keys = jax.random.split(key, 6)
    p = {}
    p["w0"], p["b0"] = _linear_init(keys[0], in_dim, hidden_dim)
    p["w1"], p["b1"] = _linear_init(keys[1], hidden_dim, hidden_dim)
    p["wsk"], p["bsk"] = _linear_init(keys[2], hidden_dim + in_dim, hidden_dim)
    p["w3"], p["b3"] = _linear_init(keys[3], hidden_dim, bottleneck_vec_dim)
    p["wd0"], p["bd0"] = _linear_init(keys[4], bottleneck_vec_dim + emb_dim,
                                      directional_hidden_dim)
    p["wd1"], p["bd1"] = _linear_init(keys[5], directional_hidden_dim, RGB_COLOR_DIM)
    return p


# ----------------------------------- main ------------------------------------ #
if __name__ == "__main__":
    # module hyper-parameters for this synthetic instantiation
    num_layers = 4
    in_dim = 16                    # eigenfunction features
    hidden_dim = 32
    skip_layer_idx = 2
    bottleneck_vec_dim = 8
    in_dim_view_dir = 1            # intrinsic strategy -> angle scalar
    include_view_dir = True
    view_dir_embedding_size = 4
    directional_hidden_dim = 32
    emb_dim = in_dim_view_dir * view_dir_embedding_size * 2 + (
        in_dim_view_dir if include_view_dir else 0)               # = 9

    N = 256                        # number of query points
    n_faces = 64

    key = jax.random.PRNGKey(0)
    k_feat, k_ray, k_idx, k_norm, k_param = jax.random.split(key, 5)

    # batch
    eigenfunctions = jax.random.normal(k_feat, (N, in_dim), jnp.float32)
    ray = jax.random.normal(k_ray, (N, 3), jnp.float32)
    unit_ray_dirs = ray / jnp.linalg.norm(ray, axis=-1, keepdims=True)
    hit_face_idxs = jax.random.randint(k_idx, (N,), 0, n_faces)
    fn = jax.random.normal(k_norm, (n_faces, 3), jnp.float32)
    face_normals = fn / jnp.linalg.norm(fn, axis=-1, keepdims=True)

    params = init_params(k_param, in_dim, hidden_dim, bottleneck_vec_dim,
                         emb_dim, directional_hidden_dim)

    # one-time parameter packing (off the per-batch hot path)
    wmain, wd1, bias, s_pad = pack_params(params, in_dim, emb_dim)
    wmain, wd1, bias = jax.device_put((wmain, wd1, bias))

    # preprocessing glue (gather + angle + Fourier view-dir encoding)
    view_emb = get_embedded_view_dir_intrinsic(
        unit_ray_dirs, hit_face_idxs, face_normals,
        view_dir_embedding_size, include_view_dir).astype(jnp.float32)

    # fused Pallas MLP: spatial TextureField + directional MLP -> RGB
    rgb = texture_field_forward(eigenfunctions, view_emb, wmain, wd1, bias,
                                s_pad=s_pad)
    rgb = jax.block_until_ready(rgb)

    assert rgb.shape == (N, RGB_COLOR_DIM)
    assert bool(jnp.all(jnp.isfinite(rgb)))

    # validate against the f32 plain-JAX reference (bf16 matmul tolerance)
    ref = reference_forward(eigenfunctions, view_emb, params)
    max_err = float(jnp.max(jnp.abs(rgb - ref)))
    assert max_err < 5e-2, max_err

    print("KERNEL_OK")
</pallas_src>

<mosaic_0001>
module attributes {stable_mosaic.version = 11 : i64} {
  func.func @_fused_texture_field_kernel(%arg0: i32, %arg1: memref<32x128xbf16, #tpu.memory_space<vmem>>, %arg2: memref<7x32x32xbf16, #tpu.memory_space<vmem>>, %arg3: memref<3x32xbf16, #tpu.memory_space<vmem>>, %arg4: memref<6x32x1xf32, #tpu.memory_space<vmem>>, %arg5: memref<3x128xf32, #tpu.memory_space<vmem>>) attributes {dimension_semantics = [#tpu.dimension_semantics<parallel>], iteration_bounds = array<i64: 2>, scalar_prefetch = 0 : i64, scratch_operands = 0 : i64, tpu.core_type = #tpu.core_type<tc>, window_params = [{transform_indices = @transform_0, window_bounds = array<i64: 32, 128>}, {pipeline_mode = #tpu.pipeline_mode<synchronous>, transform_indices = @transform_1, window_bounds = array<i64: 7, 32, 32>}, {pipeline_mode = #tpu.pipeline_mode<synchronous>, transform_indices = @transform_2, window_bounds = array<i64: 3, 32>}, {pipeline_mode = #tpu.pipeline_mode<synchronous>, transform_indices = @transform_3, window_bounds = array<i64: 6, 32, 1>}, {transform_indices = @transform_4, window_bounds = array<i64: 3, 128>}]} {
    %c0 = arith.constant 0 : index
    %c0_0 = arith.constant 0 : index
    %0 = vector.load %arg1[%c0, %c0_0] : memref<32x128xbf16, #tpu.memory_space<vmem>>, vector<32x128xbf16>
    %c0_1 = arith.constant 0 : index
    %c0_2 = arith.constant 0 : index
    %c0_3 = arith.constant 0 : index
    %1 = vector.load %arg2[%c0_1, %c0_2, %c0_3] : memref<7x32x32xbf16, #tpu.memory_space<vmem>>, vector<1x32x32xbf16>
    %2 = vector.shape_cast %1 : vector<1x32x32xbf16> to vector<32x32xbf16>
    %cst = arith.constant dense<0.000000e+00> : vector<32x128xf32>
    %3 = tpu.matmul %2, %0, %cst {dimension_numbers = #tpu.dot_dimension_numbers<[1], [0], [0], [1], [0, 0, 1, 1], [], []>} : vector<32x32xbf16>, vector<32x128xbf16>, vector<32x128xf32> -> vector<32x128xf32>
    %c0_4 = arith.constant 0 : index
    %c0_5 = arith.constant 0 : index
    %c0_6 = arith.constant 0 : index
    %4 = vector.load %arg4[%c0_4, %c0_5, %c0_6] : memref<6x32x1xf32, #tpu.memory_space<vmem>>, vector<1x32x1xf32>
    %5 = vector.shape_cast %4 : vector<1x32x1xf32> to vector<32x1xf32>
    %6 = vector.broadcast %5 : vector<32x1xf32> to vector<32x128xf32>
    %7 = arith.addf %3, %6 : vector<32x128xf32>
    %cst_7 = arith.constant 0.000000e+00 : f32
    %8 = vector.broadcast %cst_7 : f32 to vector<32x128xf32>
    %9 = arith.maximumf %7, %8 : vector<32x128xf32>
    %c1 = arith.constant 1 : index
    %c0_8 = arith.constant 0 : index
    %c0_9 = arith.constant 0 : index
    %10 = vector.load %arg2[%c1, %c0_8, %c0_9] : memref<7x32x32xbf16, #tpu.memory_space<vmem>>, vector<1x32x32xbf16>
    %11 = vector.shape_cast %10 : vector<1x32x32xbf16> to vector<32x32xbf16>
    %12 = arith.truncf %9 : vector<32x128xf32> to vector<32x128xbf16>
    %cst_10 = arith.constant dense<0.000000e+00> : vector<32x128xf32>
    %13 = tpu.matmul %11, %12, %cst_10 {dimension_numbers = #tpu.dot_dimension_numbers<[1], [0], [0], [1], [0, 0, 1, 1], [], []>} : vector<32x32xbf16>, vector<32x128xbf16>, vector<32x128xf32> -> vector<32x128xf32>
    %c1_11 = arith.constant 1 : index
    %c0_12 = arith.constant 0 : index
    %c0_13 = arith.constant 0 : index
    %14 = vector.load %arg4[%c1_11, %c0_12, %c0_13] : memref<6x32x1xf32, #tpu.memory_space<vmem>>, vector<1x32x1xf32>
    %15 = vector.shape_cast %14 : vector<1x32x1xf32> to vector<32x1xf32>
    %16 = vector.broadcast %15 : vector<32x1xf32> to vector<32x128xf32>
    %17 = arith.addf %13, %16 : vector<32x128xf32>
    %cst_14 = arith.constant 0.000000e+00 : f32
    %18 = vector.broadcast %cst_14 : f32 to vector<32x128xf32>
    %19 = arith.maximumf %17, %18 : vector<32x128xf32>
    %c2 = arith.constant 2 : index
    %c0_15 = arith.constant 0 : index
    %c0_16 = arith.constant 0 : index
    %20 = vector.load %arg2[%c2, %c0_15, %c0_16] : memref<7x32x32xbf16, #tpu.memory_space<vmem>>, vector<1x32x32xbf16>
    %21 = vector.shape_cast %20 : vector<1x32x32xbf16> to vector<32x32xbf16>
    %22 = arith.truncf %19 : vector<32x128xf32> to vector<32x128xbf16>
    %cst_17 = arith.constant dense<0.000000e+00> : vector<32x128xf32>
    %23 = tpu.matmul %21, %22, %cst_17 {dimension_numbers = #tpu.dot_dimension_numbers<[1], [0], [0], [1], [0, 0, 1, 1], [], []>} : vector<32x32xbf16>, vector<32x128xbf16>, vector<32x128xf32> -> vector<32x128xf32>
    %c3 = arith.constant 3 : index
    %c0_18 = arith.constant 0 : index
    %c0_19 = arith.constant 0 : index
    %24 = vector.load %arg2[%c3, %c0_18, %c0_19] : memref<7x32x32xbf16, #tpu.memory_space<vmem>>, vector<1x32x32xbf16>
    %25 = vector.shape_cast %24 : vector<1x32x32xbf16> to vector<32x32xbf16>
    %cst_20 = arith.constant dense<0.000000e+00> : vector<32x128xf32>
    %26 = tpu.matmul %25, %0, %cst_20 {dimension_numbers = #tpu.dot_dimension_numbers<[1], [0], [0], [1], [0, 0, 1, 1], [], []>} : vector<32x32xbf16>, vector<32x128xbf16>, vector<32x128xf32> -> vector<32x128xf32>
    %27 = arith.addf %23, %26 : vector<32x128xf32>
    %c2_21 = arith.constant 2 : index
    %c0_22 = arith.constant 0 : index
    %c0_23 = arith.constant 0 : index
    %28 = vector.load %arg4[%c2_21, %c0_22, %c0_23] : memref<6x32x1xf32, #tpu.memory_space<vmem>>, vector<1x32x1xf32>
    %29 = vector.shape_cast %28 : vector<1x32x1xf32> to vector<32x1xf32>
    %30 = vector.broadcast %29 : vector<32x1xf32> to vector<32x128xf32>
    %31 = arith.addf %27, %30 : vector<32x128xf32>
    %cst_24 = arith.constant 0.000000e+00 : f32
    %32 = vector.broadcast %cst_24 : f32 to vector<32x128xf32>
    %33 = arith.maximumf %31, %32 : vector<32x128xf32>
    %c4 = arith.constant 4 : index
    %c0_25 = arith.constant 0 : index
    %c0_26 = arith.constant 0 : index
    %34 = vector.load %arg2[%c4, %c0_25, %c0_26] : memref<7x32x32xbf16, #tpu.memory_space<vmem>>, vector<1x32x32xbf16>
    %35 = vector.shape_cast %34 : vector<1x32x32xbf16> to vector<32x32xbf16>
    %36 = arith.truncf %33 : vector<32x128xf32> to vector<32x128xbf16>
    %cst_27 = arith.constant dense<0.000000e+00> : vector<32x128xf32>
    %37 = tpu.matmul %35, %36, %cst_27 {dimension_numbers = #tpu.dot_dimension_numbers<[1], [0], [0], [1], [0, 0, 1, 1], [], []>} : vector<32x32xbf16>, vector<32x128xbf16>, vector<32x128xf32> -> vector<32x128xf32>
    %c3_28 = arith.constant 3 : index
    %c0_29 = arith.constant 0 : index
    %c0_30 = arith.constant 0 : index
    %38 = vector.load %arg4[%c3_28, %c0_29, %c0_30] : memref<6x32x1xf32, #tpu.memory_space<vmem>>, vector<1x32x1xf32>
    %39 = vector.shape_cast %38 : vector<1x32x1xf32> to vector<32x1xf32>
    %40 = vector.broadcast %39 : vector<32x1xf32> to vector<32x128xf32>
    %41 = arith.addf %37, %40 : vector<32x128xf32>
    %cst_31 = arith.constant 0.000000e+00 : f32
    %42 = vector.broadcast %cst_31 : f32 to vector<32x128xf32>
    %43 = arith.maximumf %41, %42 : vector<32x128xf32>
    %c5 = arith.constant 5 : index
    %c0_32 = arith.constant 0 : index
    %c0_33 = arith.constant 0 : index
    %44 = vector.load %arg2[%c5, %c0_32, %c0_33] : memref<7x32x32xbf16, #tpu.memory_space<vmem>>, vector<1x32x32xbf16>
    %45 = vector.shape_cast %44 : vector<1x32x32xbf16> to vector<32x32xbf16>
    %46 = arith.truncf %43 : vector<32x128xf32> to vector<32x128xbf16>
    %cst_34 = arith.constant dense<0.000000e+00> : vector<32x128xf32>
    %47 = tpu.matmul %45, %46, %cst_34 {dimension_numbers = #tpu.dot_dimension_numbers<[1], [0], [0], [1], [0, 0, 1, 1], [], []>} : vector<32x32xbf16>, vector<32x128xbf16>, vector<32x128xf32> -> vector<32x128xf32>
    %c6 = arith.constant 6 : index
    %c0_35 = arith.constant 0 : index
    %c0_36 = arith.constant 0 : index
    %48 = vector.load %arg2[%c6, %c0_35, %c0_36] : memref<7x32x32xbf16, #tpu.memory_space<vmem>>, vector<1x32x32xbf16>
    %49 = vector.shape_cast %48 : vector<1x32x32xbf16> to vector<32x32xbf16>
    %cst_37 = arith.constant dense<0.000000e+00> : vector<32x128xf32>
    %50 = tpu.matmul %49, %0, %cst_37 {dimension_numbers = #tpu.dot_dimension_numbers<[1], [0], [0], [1], [0, 0, 1, 1], [], []>} : vector<32x32xbf16>, vector<32x128xbf16>, vector<32x128xf32> -> vector<32x128xf32>
    %51 = arith.addf %47, %50 : vector<32x128xf32>
    %c4_38 = arith.constant 4 : index
    %c0_39 = arith.constant 0 : index
    %c0_40 = arith.constant 0 : index
    %52 = vector.load %arg4[%c4_38, %c0_39, %c0_40] : memref<6x32x1xf32, #tpu.memory_space<vmem>>, vector<1x32x1xf32>
    %53 = vector.shape_cast %52 : vector<1x32x1xf32> to vector<32x1xf32>
    %54 = vector.broadcast %53 : vector<32x1xf32> to vector<32x128xf32>
    %55 = arith.addf %51, %54 : vector<32x128xf32>
    %cst_41 = arith.constant 0.000000e+00 : f32
    %56 = vector.broadcast %cst_41 : f32 to vector<32x128xf32>
    %57 = arith.maximumf %55, %56 : vector<32x128xf32>
    %c0_42 = arith.constant 0 : index
    %c0_43 = arith.constant 0 : index
    %58 = vector.load %arg3[%c0_42, %c0_43] : memref<3x32xbf16, #tpu.memory_space<vmem>>, vector<3x32xbf16>
    %59 = arith.truncf %57 : vector<32x128xf32> to vector<32x128xbf16>
    %cst_44 = arith.constant dense<0.000000e+00> : vector<3x128xf32>
    %60 = tpu.matmul %58, %59, %cst_44 {dimension_numbers = #tpu.dot_dimension_numbers<[1], [0], [0], [1], [0, 0, 1, 1], [], []>} : vector<3x32xbf16>, vector<32x128xbf16>, vector<3x128xf32> -> vector<3x128xf32>
    %c5_45 = arith.constant 5 : index
    %c0_46 = arith.constant 0 : index
    %c0_47 = arith.constant 0 : index
    %61 = vector.load %arg4[%c5_45, %c0_46, %c0_47] : memref<6x32x1xf32, #tpu.memory_space<vmem>>, vector<1x32x1xf32>
    %62 = vector.shape_cast %61 : vector<1x32x1xf32> to vector<32x1xf32>
    %63 = vector.extract_strided_slice %62 {offsets = [0, 0], sizes = [3, 1], strides = [1, 1]} : vector<32x1xf32> to vector<3x1xf32>
    %64 = vector.broadcast %63 : vector<3x1xf32> to vector<3x128xf32>
    %65 = arith.addf %60, %64 : vector<3x128xf32>
    %66 = arith.negf %65 : vector<3x128xf32>
    %67 = math.exp %66 : vector<3x128xf32>
    %cst_48 = arith.constant 1.000000e+00 : f32
    %68 = vector.broadcast %cst_48 : f32 to vector<3x128xf32>
    %69 = arith.addf %68, %67 : vector<3x128xf32>
    %70 = arith.divf %68, %69 : vector<3x128xf32>
    %c0_49 = arith.constant 0 : index
    %c0_50 = arith.constant 0 : index
    %71 = vector.load %arg5[%c0_49, %c0_50] : memref<3x128xf32, #tpu.memory_space<vmem>>, vector<3x128xf32>
    tpu.vector_store %arg5[%c0_49, %c0_50], %70 {strides = array<i32>} : memref<3x128xf32, #tpu.memory_space<vmem>>, vector<3x128xf32>,
    return
  }
  func.func @transform_0(%arg0: i32) -> (i32, i32) {
    %c0_i32 = arith.constant 0 : i32
    %c0_i32_0 = arith.constant 0 : i32
    return %c0_i32, %arg0 : i32, i32
  }
  func.func @transform_1(%arg0: i32) -> (i32, i32, i32) {
    %c0_i32 = arith.constant 0 : i32
    %c0_i32_0 = arith.constant 0 : i32
    %c0_i32_1 = arith.constant 0 : i32
    %c0_i32_2 = arith.constant 0 : i32
    return %c0_i32, %c0_i32_0, %c0_i32_1 : i32, i32, i32
  }
  func.func @transform_2(%arg0: i32) -> (i32, i32) {
    %c0_i32 = arith.constant 0 : i32
    %c0_i32_0 = arith.constant 0 : i32
    %c0_i32_1 = arith.constant 0 : i32
    return %c0_i32, %c0_i32_0 : i32, i32
  }
  func.func @transform_3(%arg0: i32) -> (i32, i32, i32) {
    %c0_i32 = arith.constant 0 : i32
    %c0_i32_0 = arith.constant 0 : i32
    %c0_i32_1 = arith.constant 0 : i32
    %c0_i32_2 = arith.constant 0 : i32
    return %c0_i32, %c0_i32_0, %c0_i32_1 : i32, i32, i32
  }
  func.func @transform_4(%arg0: i32) -> (i32, i32) {
    %c0_i32 = arith.constant 0 : i32
    %c0_i32_0 = arith.constant 0 : i32
    return %c0_i32, %arg0 : i32, i32
  }
}

</mosaic_0001>

<bundles_post_ra>
// kernel: texture_field_forward.1
= control target key start
LH: loop header
LB: loop body
LE: loop exit
PB: predicated region body
PF: predicated region fallthrough
CT: control target
= control target key end

     0   :  { %9 = vsyncpa [#allocation4], 0  ;;  %s1349_s0 = inlined_call_operand.vmem [shape: bf16[32,256], index: 0, kind: input, shape index: {}]   ;;  %s1350_s1 = inlined_call_operand.vmem [shape: bf16[7,32,32], index: 1, kind: input, shape index: {}]   ;;  %s1351_s2 = inlined_call_operand.vmem [shape: bf16[3,32], index: 2, kind: input, shape index: {}]   ;;  %s1352_s3 = inlined_call_operand.vmem [shape: f32[6,32,1], index: 3, kind: input, shape index: {}]   ;;  %s1353_s4 = inlined_call_operand.hbm [shape: f32[3,256], index: 4, kind: output, shape index: {}]  }
   0x1   :  { %11 = vsyncpa [#allocation4 + $0x1], 0  ;;  %s1121_s15 = smov 0   ;;  %s1123_s16 = smov 0  }
   0x2   :  { %s1125_s17 = smov 0   ;;  %s1127_s18 = smov 0  }
   0x3 LB: > { %s834_s19 = sadd.s32 4294967295, %s1093_s18   ;;  %s835_s20 = sadd.s32 4294967294, %s1093_s18   ;;  %s1093_s18 = sphi %s1127_s18, %s1359_s18   ;;  %s1089_s17 = sphi %s1125_s17, %s1358_s17   ;;  %s1085_s16 = sphi %s1123_s16, %s1357_s16   ;;  %s1081_s15 = sphi %s1121_s15, %s1356_s15  }
   0x4   : > { %s1144_s21 = sadd.s32 1, %s1093_s18   ;;  %s24_s22 = sadd.s32 1, %s1089_s17 }
   0x5   : > { %s21_s23 = ssub.s32 %s1093_s18, %s1144_s21  ;;  %p31_p0 = scmp.ne.s32.totalorder %s1089_s17, %s1085_s16 }
   0x6   : > { %p22_p1 = scmp.eq.s32.totalorder %s21_s23, 0  ;;  %p32_p2 = scmp.eq.s32.totalorder %s1093_s18, 0 }
   0x7   : > { %p124_p3 = scmp.eq.s32.totalorder %s834_s19, 1  ;;  %p129_p4 = scmp.ne.s32.totalorder %s1085_s16, %s1081_s15 }
   0x8   : > { %s1157_s24 = scalar_select %p22_p1, %s1089_s17, %s24_s22  }
   0x9   : > { %p33_p5 = por %p32_p2, %p31_p0  ;;  %p1159_p6 = por %p124_p3, %p31_p0 }
   0xa   : > { %p130_p7 = scmp.eq.s32.totalorder %s835_s20, 1  ;;  %p837_p9 = scmp.ge.s32.totalorder %s1093_s18, 2 }
   0xc   : > { %p1163_p8 = por %p130_p7, %p129_p4  ;;  %155 = sbr.rel (%p837_p9) target bundleno = 25 (0x19), region = 28 }
  0x11   : > { %158 = sbr.rel (!%p33_p5) target bundleno = 25 (0x19), region = 32  ;;  %s160_s27 = sand.u32 (%p33_p5), 1, %s1089_s17  }
  0x12   : > { %s839_s28 = sshll.u32 (%p33_p5), %s1093_s18, 2  ;;  %s838_s29 = sshll.u32 (%p33_p5), %s160_s27, 4 }
  0x13   : > { %s164_s6 = scalar_lea.vmem (%p33_p5), %s1349_s0, %s839_s28  ;;  %s162_s7 = scalar_lea.vmem (%p33_p5), [#allocation2], %s838_s29 }
  0x14   : > { %v181_v0 = vld [vmem:[%s164_s6] sm:$0xf] (%p33_p5)  ;;  %v183_v1 = vld [vmem:[%s164_s6 + $0x8] sm:$0xf] (%p33_p5)  ;;  %v185_v2 = vld [vmem:[%s164_s6 + $0x10] sm:$0xf] (%p33_p5) }
  0x15   : > { %182 = vst [vmem:[%s162_s7] sm:$0xf] (%p33_p5), %v181_v0  ;;  %v187_v3 = vld [vmem:[%s164_s6 + $0x18] sm:$0xf] (%p33_p5) }
  0x16   : > { %184 = vst [vmem:[%s162_s7 + $0x4] sm:$0xf] %v183_v1 }
  0x17   : > { %186 = vst [vmem:[%s162_s7 + $0x8] sm:$0xf] %v185_v2 }
  0x18   : > { %188 = vst [vmem:[%s162_s7 + $0xc] sm:$0xf] %v187_v3 }
  0x19 PF: > { %p840_p10 = scmp.ge.s32.totalorder %s1093_s18, 1  ;;  %p219_p11 = scmp.lt.s32.totalorder %s1093_s18, 3 }
  0x1b   : > { %p220_p12 = pnand %p840_p10, %p219_p11 }
  0x1c   : > { %s1184_s12 = sand.u32 (!%p220_p12), 1, %s1085_s16   ;;  %s965_s29 = sshll.u32 (!%p220_p12), %s834_s19, 2 }
  0x1d   : > { %223 = sbr.rel (%p220_p12) target bundleno = 1041 (0x411), region = 73  ;;  %s841_s13 = sshll.u32 (!%p220_p12), %s1184_s12, 4 }
  0x1e   : > { %s228_s14 = scalar_lea.vmem (!%p220_p12), [#allocation2], %s841_s13  ;;  %s842_s28 = sshll.u32 (!%p220_p12), %s1184_s12, 2 }
  0x1f   : > { %s765_s6 = scalar_lea.hbm (!%p220_p12), %s1353_s4, %s965_s29  ;;  %s250_s7 = scalar_lea.vmem (!%p220_p12), [#allocation3], %s842_s28 }
  0x20   : > { %s767_s8 = sshll.u32 (!%p220_p12), %s250_s7, 4  ;;  %s769_s9 = sshll.u32 (!%p220_p12), %s765_s6, 4  ;;  %s768_s8 = int_to_ptr.vmem [resolvable:$true] %s767_s8  ;;  %s770_s9 = int_to_ptr.hbm [resolvable:$true] %s769_s9 }
  0x21   : > { %s755_s19 = scalar_lea.sflag (!%p220_p12), [#allocation4], %s1184_s12  ;;  %s1045_s10 = sshra.s32 (!%p220_p12), %s770_s9, 4  ;;  %s1046_s10 = int_to_ptr.hbm [resolvable:$true] %s1045_s10 }
  0x22   : > { %v262_v4 = vld [vmem:[%s1352_s3 + $0x10] sm:$0xff]  ;;  %v260_v5 = vld [vmem:[%s1352_s3] sm:$0xff]  ;;  %v1095_v6 = vmov 0   ;;  %v1187_v7 = vld [vmem:[%s228_s14 + $0x8] sm:$0xff]  ;;  %vm306_vm0 = vcmask 261120   ;;  %s1047_s11 = scalar_lea.hbm %s1046_s10, 4  ;;  %p1052_p2 = scmp.lt.s32.totalorder %s1046_s10, %s1353_s4 }
  0x23   : > { %1025 = vset.pattern.permute.xlu1 %v1095_v6  ;;  %1024 = vset.pattern.permute.xlu0 %v1095_v6  ;;  %v1190_v8 = vld [vmem:[%s228_s14] sm:$0xff]  ;;  %v263_v9 = vld [vmem:[%s1352_s3 + $0x18] sm:$0xff]  ;;  %v261_v10 = vld [vmem:[%s1352_s3 + $0x8] sm:$0xff]  ;;  %p1048_p13 = scmp.ne.s32.totalorder %s1046_s10, %s1047_s11  ;;  %s1051_s20 = scalar_lea.hbm %s1353_s4, 8 }
  0x24   : > { %276 = vperm.xlu0 %1024, %v262_v4   ;;  %266 = vperm.xlu1 %1025, %v260_v5   ;;  %v970_v11 = vld [vmem:[%s1350_s1] sm:$0xff]  ;;  %v866_v13 = vld [vmem:[%s1352_s3 + $0x28] sm:$0xff]  ;;  %v910_v14 = vld [vmem:[%s1352_s3 + $0x58] sm:$0xff]  ;;  %p1053_p3 = scmp.lt.s32.totalorder %s1051_s20, %s1047_s11 }
  0x25   : > { %1026 = vset.pattern.permute.xlu2 %v1095_v6  ;;  %319 = vmatpush.bf16.msra.mxu0 %v1187_v7  ;;  %v865_v12 = vld [vmem:[%s1352_s3 + $0x20] sm:$0xff]  ;;  %v971_v16 = vld [vmem:[%s1350_s1 + $0x8] sm:$0xff]  ;;  %v917_v17 = vld [vmem:[%s1352_s3 + $0x70] sm:$0xff]  ;;  %p1049_p0 = pnand %p1048_p13, %p1159_p6 }
  0x26   : > { %441 = vmatpush.bf16.msra.mxu2 %v1187_v7  ;;  %v907_v15 = vld [vmem:[%s1352_s3 + $0x40] sm:$0xff]  ;;  %v918_v18 = vld [vmem:[%s1352_s3 + $0x78] sm:$0xff]  ;;  %v916_v19 = vld [vmem:[%s1352_s3 + $0x68] sm:$0xff]  ;;  %p1054_p4 = por %p1053_p3, %p1052_p2 }
  0x27   : > { %v959_v20 = vld [vmem:[%s1352_s3 + $0x90] sm:$0xff]  ;;  %v957_v21 = vld [vmem:[%s1352_s3 + $0x80] sm:$0xff]  ;;  %v958_v22 = vld [vmem:[%s1352_s3 + $0x88] sm:$0xff]  ;;  %p1050_p1 = pneg %p1049_p0 }
  0x28   : > { %v867_v24 = vld [vmem:[%s1352_s3 + $0x30] sm:$0xff]  ;;  %v868_v26 = vld [vmem:[%s1352_s3 + $0x38] sm:$0xff]  ;;  %v908_v40 = vld [vmem:[%s1352_s3 + $0x48] sm:$0xff] }
  0x29   : > { %320 = vmatpush.bf16.msra.mxu0 %v1190_v8  ;;  %360 = vperm.xlu2 %1026, %v867_v24   ;;  %v909_v30 = vld [vmem:[%s1352_s3 + $0x50] sm:$0xff]  ;;  %v915_v46 = vld [vmem:[%s1352_s3 + $0x60] sm:$0xff]  ;;  %v960_v47 = vld [vmem:[%s1352_s3 + $0x98] sm:$0xff]  ;;  %p1055_p5 = pnand %p1054_p4, %p1050_p1 }
  0x2a   : > { %442 = vmatpush.bf16.msra.mxu2 %v1190_v8  ;;  %v972_v45 = vld [vmem:[%s1350_s1 + $0x10] sm:$0xff]  ;;  %v973_v48 = vld [vmem:[%s1350_s1 + $0x18] sm:$0xff]  ;;  %v961_v49 = vld [vmem:[%s1352_s3 + $0xa0] sm:$0xff] }
  0x2b   : > { %v976_v50 = vld [vmem:[%s1350_s1 + $0x30] sm:$0xff]  ;;  %v977_v53 = vld [vmem:[%s1350_s1 + $0x38] sm:$0xff]  ;;  %v974_v6 = vld [vmem:[%s1350_s1 + $0x20] sm:$0xff] }
  0x2c   : > { %281 = vperm.xlu0 %1024, %v263_v9   ;;  %271 = vperm.xlu1 %1025, %v261_v10  }
  0x2d   : > { %859 = vmatmul.msk.bf16.vlgmr.msra.gmra.mxu0 %vm306_vm0, %v970_v11  ;;  %895 = vmatmul.msk.bf16.vlgmr.msra.gmra.mxu2 %vm306_vm0, %v976_v50 }
  0x31   : > { %365 = vperm.xlu2 %1026, %v868_v26  }
  0x34   : > { %350 = vperm.xlu0 %1024, %v865_v12   ;;  %355 = vperm.xlu1 %1025, %v866_v13  }
  0x39   : > { %506 = vperm.xlu2 %1026, %v909_v30  }
  0x3c   : > { %511 = vperm.xlu0 %1024, %v910_v14   ;;  %496 = vperm.xlu1 %1025, %v907_v15  }
  0x3d   : > { %860 = vmatmul.msk.bf16.gmra.mxu0 %vm306_vm0, %v971_v16  ;;  %896 = vmatmul.msk.bf16.gmra.mxu2 %vm306_vm0, %v977_v53 }
  0x41   : > { %501 = vperm.xlu2 %1026, %v908_v40  }
  0x44   : > { %546 = vperm.xlu0 %1024, %v917_v17   ;;  %551 = vperm.xlu1 %1025, %v918_v18  }
  0x49   : > { %536 = vperm.xlu2 %1026, %v915_v46  }
  0x4c   : > { %541 = vperm.xlu0 %1024, %v916_v19   ;;  %692 = vperm.xlu1 %1025, %v959_v20  }
  0x51   : > { %697 = vperm.xlu2 %1026, %v960_v47  }
  0x54   : > { %682 = vperm.xlu0 %1024, %v957_v21   ;;  %687 = vperm.xlu1 %1025, %v958_v22  }
  0x59   : > { %715 = vperm.xlu2 %1026, %v961_v49  }
  0x83   : > { %v361_v54 = vpop.permute.xlu2 %360 }
  0x8b   : > { %v366_v58 = vpop.permute.xlu2 %365 }
  0x93   : > { %v507_v13 = vpop.permute.xlu2 %506 }
  0x96   : > { %v277_v27 = vpop.permute.xlu0 %276  ;;  %v267_v28 = vpop.permute.xlu1 %266 }
  0x9e   : > { %v282_v31 = vpop.permute.xlu0 %281  ;;  %v272_v33 = vpop.permute.xlu1 %271 }
  0xa6   : > { %v356_v56 = vpop.permute.xlu1 %355  ;;  %v351_v62 = vpop.permute.xlu0 %350 }
  0xaa   : > { %v322_v23 = vpop.f32.mrf.mxu0 }
  0xab   : > { %v323_v37 = vadd.f32 %v322_v23, %v267_v28  ;;  %v502_v23 = vpop.permute.xlu2 %501 }
  0xad   : > { %v332_v43 = vmax.f32 %v323_v37, 0.0  ;;  %v982_v37 = vld [vmem:[%s1350_s1 + $0x60] sm:$0xff] }
  0xae   : > { %v512_v22 = vpop.permute.xlu0 %511  ;;  %v497_v26 = vpop.permute.xlu1 %496 }
  0xb2   : > { %v324_v25 = vpop.f32.mrf.mxu0 }
  0xb3   : > { %v325_v35 = vadd.f32 %v324_v25, %v272_v33 }
  0xb5   : > { %v333_v41 = vmax.f32 %v325_v35, 0.0  ;;  %v979_v35 = vld [vmem:[%s1350_s1 + $0x48] sm:$0xff] }
  0xb7   : > { %v341_v44 = vpack.c.bf16 %v333_v41, %v332_v43  ;;  %v983_v41 = vld [vmem:[%s1350_s1 + $0x68] sm:$0xff] }
  0xba   : > { %v327_v29 = vpop.f32.mrf.mxu0 }
  0xbb   : > { %v328_v32 = vadd.f32 %v327_v29, %v277_v27 }
  0xbd   : > { %v334_v38 = vmax.f32 %v328_v32, 0.0 }
  0xc2   : > { %v329_v34 = vpop.f32.mrf.mxu0 }
  0xc3   : > { %v330_v36 = vadd.f32 %v329_v34, %v282_v31  ;;  %v978_v34 = vld [vmem:[%s1350_s1 + $0x40] sm:$0xff] }
  0xc5   : > { %v335_v39 = vmax.f32 %v330_v36, 0.0 }
  0xc7   : > { %v342_v42 = vpack.c.bf16 %v335_v39, %v334_v38  ;;  %v547_v39 = vpop.permute.xlu0 %546 }
  0xc9   : > { %390 = vmatpush.bf16.msra.mxu1 %v342_v42  ;;  %v552_v42 = vpop.permute.xlu1 %551 }
  0xcd   : > { %391 = vmatpush.bf16.msra.mxu1 %v341_v44 }
  0xcf   : > { %v542_v44 = vpop.permute.xlu0 %541 }
  0xd0   : > { %877 = vmatmul.msk.bf16.vlgmr.msra.gmra.mxu1 %vm306_vm0, %v972_v45 }
  0xd1   : > { %627 = vmatpush.bf16.msrb.mxu1 %v1187_v7  ;;  %v975_v7 = vld [vmem:[%s1350_s1 + $0x28] sm:$0xff] }
  0xd5   : > { %628 = vmatpush.bf16.msrb.mxu1 %v1190_v8  ;;  %v444_v8 = vpop.f32.mrf.mxu2 }
  0xdd   : > { %v446_v10 = vpop.f32.mrf.mxu2 }
  0xe0   : > { %878 = vmatmul.msk.bf16.gmra.mxu1 %vm306_vm0, %v973_v48  ;;  %v537_v48 = vpop.permute.xlu2 %536 }
  0xe5   : > { %v449_v12 = vpop.f32.mrf.mxu2 }
  0xed   : > { %v451_v17 = vpop.f32.mrf.mxu2 }
  0xf0   : > { %945 = vmatmul.msk.bf16.vlgmr.msrb.gmra.mxu1 %vm306_vm0, %v982_v37 }
 0x100   : > { %946 = vmatmul.msk.bf16.gmra.mxu1 %vm306_vm0, %v983_v41 }
 0x14d   : > { %v393_v51 = vpop.f32.mrf.mxu1 }
 0x14e   : > { %v394_v63 = vadd.f32 %v393_v51, %v351_v62 }
 0x150   : > { %v403_v4 = vmax.f32 %v394_v63, 0.0  ;;  %v693_v63 = vpop.permute.xlu1 %692 }
 0x155   : > { %v395_v52 = vpop.f32.mrf.mxu1 }
 0x156   : > { %v396_v60 = vadd.f32 %v395_v52, %v356_v56  ;;  %v980_v56 = vld [vmem:[%s1350_s1 + $0x50] sm:$0xff] }
 0x158   : > { %v404_v2 = vmax.f32 %v396_v60, 0.0 }
 0x15a   : > { %v412_v5 = vpack.c.bf16 %v404_v2, %v403_v4 }
 0x15d   : > { %v398_v55 = vpop.f32.mrf.mxu1 }
 0x15e   : > { %v399_v57 = vadd.f32 %v398_v55, %v361_v54 }
 0x160   : > { %v405_v0 = vmax.f32 %v399_v57, 0.0  ;;  %v981_v57 = vld [vmem:[%s1350_s1 + $0x58] sm:$0xff] }
 0x165   : > { %v400_v59 = vpop.f32.mrf.mxu1 }
 0x166   : > { %v401_v61 = vadd.f32 %v400_v59, %v366_v58 }
 0x168   : > { %v406_v1 = vmax.f32 %v401_v61, 0.0 }
 0x16a   : > { %v413_v3 = vpack.c.bf16 %v406_v1, %v405_v0 }
 0x16c   : > { %476 = vmatpush.bf16.msra.mxu3 %v413_v3 }
 0x16d   : > { %v630_v58 = vpop.f32.mrf.mxu1 }
 0x170   : > { %477 = vmatpush.bf16.msra.mxu3 %v412_v5 }
 0x173   : > { %905 = vmatmul.msk.bf16.vlgmr.msra.gmra.mxu3 %vm306_vm0, %v974_v6 }
 0x175   : > { %v632_v60 = vpop.f32.mrf.mxu1 }
 0x17d   : > { %v635_v62 = vpop.f32.mrf.mxu1 }
 0x183   : > { %906 = vmatmul.msk.bf16.gmra.mxu3 %vm306_vm0, %v975_v7 }
 0x185   : > { %v637_v3 = vpop.f32.mrf.mxu1 }
 0x1f6   : > { %v479_v9 = vpop.f32.mrf.mxu3 }
 0x1f7   : > { %v480_v19 = vadd.f32 %v479_v9, %v444_v8  ;;  %v688_v8 = vpop.permute.xlu1 %687  ;;  %v698_v9 = vpop.permute.xlu2 %697 }
 0x1f9   : > { %v514_v27 = vadd.f32 %v497_v26, %v480_v19 }
 0x1fb   : > { %v518_v32 = vmax.f32 %v514_v27, 0.0 }
 0x1fe   : > { %v481_v11 = vpop.f32.mrf.mxu3 }
 0x1ff   : > { %v482_v16 = vadd.f32 %v481_v11, %v446_v10 }
 0x201   : > { %v515_v24 = vadd.f32 %v502_v23, %v482_v16 }
 0x203   : > { %v519_v30 = vmax.f32 %v515_v24, 0.0 }
 0x205   : > { %v527_v33 = vpack.c.bf16 %v519_v30, %v518_v32 }
 0x206   : > { %v484_v14 = vpop.f32.mrf.mxu3 }
 0x207   : > { %v485_v15 = vadd.f32 %v484_v14, %v449_v12  ;;  %v683_v12 = vpop.permute.xlu0 %682 }
 0x209   : > { %v516_v20 = vadd.f32 %v507_v13, %v485_v15 }
 0x20b   : > { %v520_v28 = vmax.f32 %v516_v20, 0.0  ;;  %v708_v20 = vld [vmem:[%s1351_s2] sm:$0x3] }
 0x20e   : > { %v486_v18 = vpop.f32.mrf.mxu3 }
 0x20f   : > { %v487_v21 = vadd.f32 %v486_v18, %v451_v17 }
 0x211   : > { %v517_v25 = vadd.f32 %v512_v22, %v487_v21  ;;  %v716_v21 = vpop.permute.xlu2 %715 }
 0x213   : > { %v521_v29 = vmax.f32 %v517_v25, 0.0 }
 0x215   : > { %v528_v31 = vpack.c.bf16 %v521_v29, %v520_v28 }
 0x217   : > { %576 = vmatpush.bf16.msrb.mxu0 %v528_v31 }
 0x21b   : > { %577 = vmatpush.bf16.msrb.mxu0 %v527_v33 }
 0x21e   : > { %927 = vmatmul.msk.bf16.vlgmr.msrb.gmra.mxu0 %vm306_vm0, %v978_v34 }
 0x22e   : > { %928 = vmatmul.msk.bf16.gmra.mxu0 %vm306_vm0, %v979_v35 }
 0x29b   : > { %v579_v36 = vpop.f32.mrf.mxu0 }
 0x29c   : > { %v580_v49 = vadd.f32 %v579_v36, %v537_v48 }
 0x29e   : > { %v589_v54 = vmax.f32 %v580_v49, 0.0 }
 0x2a3   : > { %v581_v38 = vpop.f32.mrf.mxu0 }
 0x2a4   : > { %v582_v46 = vadd.f32 %v581_v38, %v542_v44 }
 0x2a6   : > { %v590_v52 = vmax.f32 %v582_v46, 0.0 }
 0x2a8   : > { %v598_v55 = vpack.c.bf16 %v590_v52, %v589_v54 }
 0x2ab   : > { %v584_v40 = vpop.f32.mrf.mxu0 }
 0x2ac   : > { %v585_v43 = vadd.f32 %v584_v40, %v547_v39 }
 0x2ae   : > { %v591_v50 = vmax.f32 %v585_v43, 0.0 }
 0x2b3   : > { %v586_v45 = vpop.f32.mrf.mxu0 }
 0x2b4   : > { %v587_v47 = vadd.f32 %v586_v45, %v552_v42 }
 0x2b6   : > { %v592_v51 = vmax.f32 %v587_v47, 0.0 }
 0x2b8   : > { %v599_v53 = vpack.c.bf16 %v592_v51, %v591_v50 }
 0x2ba   : > { %662 = vmatpush.bf16.msrb.mxu2 %v599_v53 }
 0x2be   : > { %663 = vmatpush.bf16.msrb.mxu2 %v598_v55 }
 0x2c1   : > { %955 = vmatmul.msk.bf16.vlgmr.msrb.gmra.mxu2 %vm306_vm0, %v980_v56 }
 0x2d1   : > { %956 = vmatmul.msk.bf16.gmra.mxu2 %vm306_vm0, %v981_v57 }
 0x344   : > { %v665_v59 = vpop.f32.mrf.mxu2 }
 0x345   : > { %v666_v5 = vadd.f32 %v665_v59, %v630_v58 }
 0x347   : > { %v700_v13 = vadd.f32 %v683_v12, %v666_v5 }
 0x349   : > { %v704_v18 = vmax.f32 %v700_v13, 0.0 }
 0x34c   : > { %v667_v61 = vpop.f32.mrf.mxu2 }
 0x34d   : > { %v668_v2 = vadd.f32 %v667_v61, %v632_v60 }
 0x34f   : > { %v701_v10 = vadd.f32 %v688_v8, %v668_v2 }
 0x351   : > { %v705_v16 = vmax.f32 %v701_v10, 0.0 }
 0x353   : > { %v709_v19 = vpack.c.bf16 %v705_v16, %v704_v18 }
 0x354   : > { %v670_v0 = vpop.f32.mrf.mxu2 }
 0x355   : > { %v671_v1 = vadd.f32 %v670_v0, %v635_v62 }
 0x357   : > { %v702_v6 = vadd.f32 %v693_v63, %v671_v1 }
 0x359   : > { %v706_v14 = vmax.f32 %v702_v6, 0.0 }
 0x35c   : > { %v672_v4 = vpop.f32.mrf.mxu2 }
 0x35d   : > { %v673_v7 = vadd.f32 %v672_v4, %v637_v3 }
 0x35f   : > { %v703_v11 = vadd.f32 %v698_v9, %v673_v7 }
 0x361   : > { %v707_v15 = vmax.f32 %v703_v11, 0.0 }
 0x363   : > { %v710_v17 = vpack.c.bf16 %v707_v15, %v706_v14 }
 0x365   : > { %727 = vmatpush.bf16.msrb.mxu3 %v710_v17 }
 0x369   : > { %728 = vmatpush.bf16.msrb.mxu3 %v709_v19 }
 0x36c   : > { %962 = vmatmul.msk.bf16.vlgmr.msrb.gmra.mxu3 %vm306_vm0, %v708_v20 }
 0x3ef   : > { %v730_v22 = vpop.f32.mrf.mxu3 }
 0x3f0   : > { %v731_v23 = vadd.f32 %v730_v22, %v716_v21 }
 0x3f2   : > { %v963_v24 = vmul.f32 -1.442695, %v731_v23 }
 0x3f4   : > { %1027 = vpow2.f32 %v963_v24 }
 0x3f7   : > { %v732_v25 = vpop.f32.mrf.mxu3 }
 0x3fa   : > { %v1028_v26 = vpop.eup %1027 }
 0x3fb   : > { %v737_v27 = vadd.f32 1.0, %v1028_v26 }
 0x3fd   : > { %1029 = vrcp.f32 %v737_v27  ;;  %v749_v31 = vand.u32 2147483648, %v737_v27  ;;  %v747_v33 = vand.u32 2147483647, %v737_v27  ;;  %vm743_vm2 = vweird.f32 %v737_v27 }
 0x3ff   : > { %v750_v35 = vor.u32 1.1754944e-38, %v749_v31  ;;  %vm748_vm4 = vcmp.eq.f32.partialorder %v747_v33, 8.507059e+37 }
 0x403   : > { %v1030_v28 = vpop.eup %1029 }
 0x404   : > { %v739_v29 = vmul.f32 %v1030_v28, %v737_v27  ;;  %vm744_vm1 = vweird.f32 %v1030_v28 }
 0x405   : > { %vm745_vm3 = vmor %vm743_vm2, %vm744_vm1 }
 0x406   : > { %v740_v30 = vsub.f32 1.0, %v739_v29 }
 0x408   : > { %v741_v32 = vmul.f32 %v1030_v28, %v740_v30 }
 0x40a   : > { %v742_v34 = vadd.f32 %v1030_v28, %v741_v32 }
 0x40c   : > { %v746_v36 = vsel %vm745_vm3, %v1030_v28, %v742_v34 }
 0x40d   : > { %v751_v37 = vsel %vm748_vm4, %v750_v35, %v746_v36 }
 0x40e   : > { %753 = vst [vmem:[%s250_s7] sm:$0x7] %v751_v37 }
 0x40f   : > { %1058 = shalt.err (!%p1055_p5)
}
 0x410   : > { %984 = dma.vmem_to_hbm [thread:$0]  (%p1159_p6), %s768_s8, 64, %s770_s9, %s755_s19  }
 0x411 PF: > { %s781_s12 = sand.u32 1, %s1081_s15   ;;  %p987_p7 = pnand %p837_p9, %p1163_p8 }
 0x412   : > { %s782_s27 = scalar_lea.sflag [#allocation4], %s781_s12 }
 0x413   : > { %p988_p10 = pneg %p987_p7 }
 0x415   : > { %1076 = dma.done.wait (%p988_p10), %s782_s27, 64  }
 0x416   : > { %1078 = vsyncadd (%p988_p10), %s782_s27, 4294967232  ;;  %p14_p11 = scmp.ge.s32.totalorder %s1144_s21, 4   ;;  %s1356_s15 = smov %s1085_s16 }
 0x417   : > { %s1357_s16 = smov %s1089_s17  ;;  %s1358_s17 = smov %s1157_s24 }
 0x418   : > { %s1359_s18 = smov %s1144_s21  ;;  %16 = sbr.rel (!%p14_p11) target bundleno = 3 (0x3), region = 128 }
 0x41d   :  { %788 = vsyncpa [#allocation4], 1 }
 0x41e   :  { %790 = vsyncpa [#allocation4 + $0x1], 1 }

</bundles_post_ra>
